<compile_context>
chip_gen: v6e
topology: v6e:2x2x1
jax: 0.10.0
libtpu: 0.0.40
codegen_flags: <defaults>
</compile_context>

<pallas_src>
import jax
import jax.numpy as jnp
from jax import lax
from jax.experimental import pallas as pl
from jax.experimental.pallas import tpu as pltpu

embedding_size = 2
vocab_size = 11

_LANE = 128
_SUBLANE = 8


def _w2v_kernel(idx_ref, emb_ref, w_ref, b_ref, logits_ref, e_ref):
    # idx_ref    : (bsz_p,)          int32  SMEM (scalar prefetch)
    # emb_ref    : (vocab_p, emb_p)  f32    zero-padded embedding table
    # w_ref      : (vocab_p, emb_p)  f32    zero-padded linear weight (NOT transposed)
    # b_ref      : (1, vocab_p)      f32    zero-padded linear bias
    # logits_ref : (tm, vocab_p)     f32
    # e_ref      : (tm, emb_p)       f32
    i = pl.program_id(0)
    tm = e_ref.shape[0]

    # Row gather: e[r, :] = emb_table[x[i*tm + r], :]
    # Static unroll over the batch tile (tm is 8 at the toy batch size;
    # capped at 256 in the wrapper).  Padded batch rows use index 0 (valid)
    # and are sliced off by the wrapper.
    for r in range(tm):
        row = idx_ref[i * tm + r]
        e_ref[pl.ds(r, 1), :] = emb_ref[pl.ds(row, 1), :]

    # logits = e @ W^T + b, contracting the emb axes in-kernel
    # (no transposed copy of W is ever materialized).
    logits_ref[...] = lax.dot_general(
        e_ref[...], w_ref[...],
        dimension_numbers=(((1,), (1,)), ((), ())),
        preferred_element_type=jnp.float32) + b_ref[...]
    # TODO(synk): log_softmax(logits) is computed-and-dropped in the PyTorch
    # forward (it returns (logits, e)); omitted on purpose.


def prepare_word2vec_params(emb_weight, lin_weight, lin_bias):
    """Zero-pad the weights ONCE (model init), not on every forward call."""
    vocab, emb = emb_weight.shape
    vocab_p = pl.cdiv(vocab, _LANE) * _LANE
    emb_p = pl.cdiv(emb, _LANE) * _LANE
    emb_w_p = jnp.zeros((vocab_p, emb_p), jnp.float32).at[:vocab, :emb].set(
        emb_weight.astype(jnp.float32))
    lin_w_p = jnp.zeros((vocab_p, emb_p), jnp.float32).at[:vocab, :emb].set(
        lin_weight.astype(jnp.float32))
    bias_p = jnp.zeros((1, vocab_p), jnp.float32).at[0, :vocab].set(
        lin_bias.astype(jnp.float32))
    return {"emb_w_p": emb_w_p, "lin_w_p": lin_w_p, "bias_p": bias_p,
            "vocab": vocab, "emb": emb}


def word2vec_forward(x, params):
    """x: int array (bsz,). Returns (logits (bsz, vocab), e (bsz, emb))."""
    emb_w_p = params["emb_w_p"]
    lin_w_p = params["lin_w_p"]
    bias_p = params["bias_p"]
    vocab, emb = params["vocab"], params["emb"]
    vocab_p, emb_p = emb_w_p.shape
    bsz = x.shape[0]

    # Batch tiling: multiple of 8 sublanes, up to 256 rows per grid step to
    # amortize per-step overhead.
    bsz_p = pl.cdiv(bsz, _SUBLANE) * _SUBLANE
    tm = min(bsz_p, 256)
    bsz_p = pl.cdiv(bsz_p, tm) * tm
    grid = (bsz_p // tm,)

    # Indices (scalar-prefetch operand -> SMEM). Padded rows use token 0.
    x_p = jnp.zeros((bsz_p,), jnp.int32).at[:bsz].set(x.astype(jnp.int32))

    out_shape = (
        jax.ShapeDtypeStruct((bsz_p, vocab_p), jnp.float32),
        jax.ShapeDtypeStruct((bsz_p, emb_p), jnp.float32),
    )

    grid_spec = pltpu.PrefetchScalarGridSpec(
        num_scalar_prefetch=1,
        grid=grid,
        in_specs=[
            pl.BlockSpec((vocab_p, emb_p), lambda i, idx: (0, 0)),   # emb table
            pl.BlockSpec((vocab_p, emb_p), lambda i, idx: (0, 0)),   # linear weight
            pl.BlockSpec((1, vocab_p), lambda i, idx: (0, 0)),       # linear bias
        ],
        out_specs=(
            pl.BlockSpec((tm, vocab_p), lambda i, idx: (i, 0)),      # logits
            pl.BlockSpec((tm, emb_p), lambda i, idx: (i, 0)),        # e
        ),
    )

    logits_p, e_p = pl.pallas_call(
        _w2v_kernel,
        out_shape=out_shape,
        grid_spec=grid_spec,
        compiler_params=pltpu.CompilerParams(
            dimension_semantics=("parallel",)),
    )(x_p, emb_w_p, lin_w_p, bias_p)

    # Slice the zero-padded lanes/rows back off.
    return logits_p[:bsz, :vocab], e_p[:bsz, :emb]


if __name__ == "__main__":
    key = jax.random.PRNGKey(0)
    k_emb, k_w, k_b, k_x = jax.random.split(key, 4)

    bsz = 8

    # Embedding init: uniform(-0.5/embedding_size, 0.5/embedding_size)
    init_w = 0.5 / embedding_size
    emb_weight = jax.random.uniform(
        k_emb, (vocab_size, embedding_size), minval=-init_w, maxval=init_w,
        dtype=jnp.float32)

    # Linear init (PyTorch default): uniform(+-1/sqrt(in_features))
    bound = 1.0 / (embedding_size ** 0.5)
    lin_weight = jax.random.uniform(
        k_w, (vocab_size, embedding_size), minval=-bound, maxval=bound,
        dtype=jnp.float32)
    lin_bias = jax.random.uniform(
        k_b, (vocab_size,), minval=-bound, maxval=bound, dtype=jnp.float32)

    x = jax.random.randint(k_x, (bsz,), 0, vocab_size, dtype=jnp.int32)

    # Pad weights once (model init), then run the forward.
    params = prepare_word2vec_params(emb_weight, lin_weight, lin_bias)
    logits, e = word2vec_forward(x, params)
    jax.block_until_ready((logits, e))

    # Reference check in plain JAX.
    e_ref = emb_weight[x]                              # (bsz, emb)
    logits_ref = e_ref @ lin_weight.T + lin_bias       # (bsz, vocab)
    assert e.shape == (bsz, embedding_size) and logits.shape == (bsz, vocab_size)
    assert jnp.allclose(e, e_ref, atol=1e-6), "embedding mismatch"
    assert jnp.allclose(logits, logits_ref, atol=1e-5), "logits mismatch"

    print("KERNEL_OK")
</pallas_src>

<mosaic_0001>
module attributes {stable_mosaic.version = 11 : i64} {
  func.func @_w2v_kernel(%arg0: i32, %arg1: memref<8xi32, #tpu.memory_space<smem>>, %arg2: memref<128x128xf32, #tpu.memory_space<vmem>>, %arg3: memref<128x128xf32, #tpu.memory_space<vmem>>, %arg4: memref<1x128xf32, #tpu.memory_space<vmem>>, %arg5: memref<8x128xf32, #tpu.memory_space<vmem>>, %arg6: memref<8x128xf32, #tpu.memory_space<vmem>>) attributes {dimension_semantics = [#tpu.dimension_semantics<parallel>], iteration_bounds = array<i64: 1>, scalar_prefetch = 1 : i64, scratch_operands = 0 : i64, tpu.core_type = #tpu.core_type<tc>, window_params = [{pipeline_mode = #tpu.pipeline_mode<synchronous>, transform_indices = @transform_0, window_bounds = array<i64: 128, 128>}, {pipeline_mode = #tpu.pipeline_mode<synchronous>, transform_indices = @transform_1, window_bounds = array<i64: 128, 128>}, {pipeline_mode = #tpu.pipeline_mode<synchronous>, transform_indices = @transform_2, window_bounds = array<i64: 1, 128>}, {transform_indices = @transform_3, window_bounds = array<i64: 8, 128>}, {transform_indices = @transform_4, window_bounds = array<i64: 8, 128>}]} {
    %c8_i32 = arith.constant 8 : i32
    %0 = arith.muli %arg0, %c8_i32 : i32
    %c0_i32 = arith.constant 0 : i32
    %1 = arith.addi %0, %c0_i32 : i32
    %2 = arith.index_cast %1 : i32 to index
    %3 = memref.load %arg1[%2] : memref<8xi32, #tpu.memory_space<smem>>
    %4 = arith.index_cast %3 : i32 to index
    %c0 = arith.constant 0 : index
    %5 = vector.load %arg2[%4, %c0] : memref<128x128xf32, #tpu.memory_space<vmem>>, vector<1x128xf32>
    %c0_0 = arith.constant 0 : index
    %c0_1 = arith.constant 0 : index
    %6 = vector.load %arg6[%c0_0, %c0_1] : memref<8x128xf32, #tpu.memory_space<vmem>>, vector<1x128xf32>
    tpu.vector_store %arg6[%c0_0, %c0_1], %5 {strides = array<i32>} : memref<8x128xf32, #tpu.memory_space<vmem>>, vector<1x128xf32>,
    %c8_i32_2 = arith.constant 8 : i32
    %7 = arith.muli %arg0, %c8_i32_2 : i32
    %c1_i32 = arith.constant 1 : i32
    %8 = arith.addi %7, %c1_i32 : i32
    %9 = arith.index_cast %8 : i32 to index
    %10 = memref.load %arg1[%9] : memref<8xi32, #tpu.memory_space<smem>>
    %11 = arith.index_cast %10 : i32 to index
    %c0_3 = arith.constant 0 : index
    %12 = vector.load %arg2[%11, %c0_3] : memref<128x128xf32, #tpu.memory_space<vmem>>, vector<1x128xf32>
    %c1 = arith.constant 1 : index
    %c0_4 = arith.constant 0 : index
    %13 = vector.load %arg6[%c1, %c0_4] : memref<8x128xf32, #tpu.memory_space<vmem>>, vector<1x128xf32>
    tpu.vector_store %arg6[%c1, %c0_4], %12 {strides = array<i32>} : memref<8x128xf32, #tpu.memory_space<vmem>>, vector<1x128xf32>,
    %c8_i32_5 = arith.constant 8 : i32
    %14 = arith.muli %arg0, %c8_i32_5 : i32
    %c2_i32 = arith.constant 2 : i32
    %15 = arith.addi %14, %c2_i32 : i32
    %16 = arith.index_cast %15 : i32 to index
    %17 = memref.load %arg1[%16] : memref<8xi32, #tpu.memory_space<smem>>
    %18 = arith.index_cast %17 : i32 to index
    %c0_6 = arith.constant 0 : index
    %19 = vector.load %arg2[%18, %c0_6] : memref<128x128xf32, #tpu.memory_space<vmem>>, vector<1x128xf32>
    %c2 = arith.constant 2 : index
    %c0_7 = arith.constant 0 : index
    %20 = vector.load %arg6[%c2, %c0_7] : memref<8x128xf32, #tpu.memory_space<vmem>>, vector<1x128xf32>
    tpu.vector_store %arg6[%c2, %c0_7], %19 {strides = array<i32>} : memref<8x128xf32, #tpu.memory_space<vmem>>, vector<1x128xf32>,
    %c8_i32_8 = arith.constant 8 : i32
    %21 = arith.muli %arg0, %c8_i32_8 : i32
    %c3_i32 = arith.constant 3 : i32
    %22 = arith.addi %21, %c3_i32 : i32
    %23 = arith.index_cast %22 : i32 to index
    %24 = memref.load %arg1[%23] : memref<8xi32, #tpu.memory_space<smem>>
    %25 = arith.index_cast %24 : i32 to index
    %c0_9 = arith.constant 0 : index
    %26 = vector.load %arg2[%25, %c0_9] : memref<128x128xf32, #tpu.memory_space<vmem>>, vector<1x128xf32>
    %c3 = arith.constant 3 : index
    %c0_10 = arith.constant 0 : index
    %27 = vector.load %arg6[%c3, %c0_10] : memref<8x128xf32, #tpu.memory_space<vmem>>, vector<1x128xf32>
    tpu.vector_store %arg6[%c3, %c0_10], %26 {strides = array<i32>} : memref<8x128xf32, #tpu.memory_space<vmem>>, vector<1x128xf32>,
    %c8_i32_11 = arith.constant 8 : i32
    %28 = arith.muli %arg0, %c8_i32_11 : i32
    %c4_i32 = arith.constant 4 : i32
    %29 = arith.addi %28, %c4_i32 : i32
    %30 = arith.index_cast %29 : i32 to index
    %31 = memref.load %arg1[%30] : memref<8xi32, #tpu.memory_space<smem>>
    %32 = arith.index_cast %31 : i32 to index
    %c0_12 = arith.constant 0 : index
    %33 = vector.load %arg2[%32, %c0_12] : memref<128x128xf32, #tpu.memory_space<vmem>>, vector<1x128xf32>
    %c4 = arith.constant 4 : index
    %c0_13 = arith.constant 0 : index
    %34 = vector.load %arg6[%c4, %c0_13] : memref<8x128xf32, #tpu.memory_space<vmem>>, vector<1x128xf32>
    tpu.vector_store %arg6[%c4, %c0_13], %33 {strides = array<i32>} : memref<8x128xf32, #tpu.memory_space<vmem>>, vector<1x128xf32>,
    %c8_i32_14 = arith.constant 8 : i32
    %35 = arith.muli %arg0, %c8_i32_14 : i32
    %c5_i32 = arith.constant 5 : i32
    %36 = arith.addi %35, %c5_i32 : i32
    %37 = arith.index_cast %36 : i32 to index
    %38 = memref.load %arg1[%37] : memref<8xi32, #tpu.memory_space<smem>>
    %39 = arith.index_cast %38 : i32 to index
    %c0_15 = arith.constant 0 : index
    %40 = vector.load %arg2[%39, %c0_15] : memref<128x128xf32, #tpu.memory_space<vmem>>, vector<1x128xf32>
    %c5 = arith.constant 5 : index
    %c0_16 = arith.constant 0 : index
    %41 = vector.load %arg6[%c5, %c0_16] : memref<8x128xf32, #tpu.memory_space<vmem>>, vector<1x128xf32>
    tpu.vector_store %arg6[%c5, %c0_16], %40 {strides = array<i32>} : memref<8x128xf32, #tpu.memory_space<vmem>>, vector<1x128xf32>,
    %c8_i32_17 = arith.constant 8 : i32
    %42 = arith.muli %arg0, %c8_i32_17 : i32
    %c6_i32 = arith.constant 6 : i32
    %43 = arith.addi %42, %c6_i32 : i32
    %44 = arith.index_cast %43 : i32 to index
    %45 = memref.load %arg1[%44] : memref<8xi32, #tpu.memory_space<smem>>
    %46 = arith.index_cast %45 : i32 to index
    %c0_18 = arith.constant 0 : index
    %47 = vector.load %arg2[%46, %c0_18] : memref<128x128xf32, #tpu.memory_space<vmem>>, vector<1x128xf32>
    %c6 = arith.constant 6 : index
    %c0_19 = arith.constant 0 : index
    %48 = vector.load %arg6[%c6, %c0_19] : memref<8x128xf32, #tpu.memory_space<vmem>>, vector<1x128xf32>
    tpu.vector_store %arg6[%c6, %c0_19], %47 {strides = array<i32>} : memref<8x128xf32, #tpu.memory_space<vmem>>, vector<1x128xf32>,
    %c8_i32_20 = arith.constant 8 : i32
    %49 = arith.muli %arg0, %c8_i32_20 : i32
    %c7_i32 = arith.constant 7 : i32
    %50 = arith.addi %49, %c7_i32 : i32
    %51 = arith.index_cast %50 : i32 to index
    %52 = memref.load %arg1[%51] : memref<8xi32, #tpu.memory_space<smem>>
    %53 = arith.index_cast %52 : i32 to index
    %c0_21 = arith.constant 0 : index
    %54 = vector.load %arg2[%53, %c0_21] : memref<128x128xf32, #tpu.memory_space<vmem>>, vector<1x128xf32>
    %c7 = arith.constant 7 : index
    %c0_22 = arith.constant 0 : index
    %55 = vector.load %arg6[%c7, %c0_22] : memref<8x128xf32, #tpu.memory_space<vmem>>, vector<1x128xf32>
    tpu.vector_store %arg6[%c7, %c0_22], %54 {strides = array<i32>} : memref<8x128xf32, #tpu.memory_space<vmem>>, vector<1x128xf32>,
    %c0_23 = arith.constant 0 : index
    %c0_24 = arith.constant 0 : index
    %56 = vector.load %arg6[%c0_23, %c0_24] : memref<8x128xf32, #tpu.memory_space<vmem>>, vector<8x128xf32>
    %c0_25 = arith.constant 0 : index
    %c0_26 = arith.constant 0 : index
    %57 = vector.load %arg3[%c0_25, %c0_26] : memref<128x128xf32, #tpu.memory_space<vmem>>, vector<128x128xf32>
    %cst = arith.constant dense<0.000000e+00> : vector<8x128xf32>
    %58 = tpu.matmul %56, %57, %cst {dimension_numbers = #tpu.dot_dimension_numbers<[1], [1], [0], [0], [0, 0, 1, 0], [], []>} : vector<8x128xf32>, vector<128x128xf32>, vector<8x128xf32> -> vector<8x128xf32>
    %c0_27 = arith.constant 0 : index
    %c0_28 = arith.constant 0 : index
    %59 = vector.load %arg4[%c0_27, %c0_28] : memref<1x128xf32, #tpu.memory_space<vmem>>, vector<1x128xf32>
    %60 = vector.broadcast %59 : vector<1x128xf32> to vector<8x128xf32>
    %61 = arith.addf %58, %60 : vector<8x128xf32>
    %c0_29 = arith.constant 0 : index
    %c0_30 = arith.constant 0 : index
    %62 = vector.load %arg5[%c0_29, %c0_30] : memref<8x128xf32, #tpu.memory_space<vmem>>, vector<8x128xf32>
    tpu.vector_store %arg5[%c0_29, %c0_30], %61 {strides = array<i32>} : memref<8x128xf32, #tpu.memory_space<vmem>>, vector<8x128xf32>,
    return
  }
  func.func @transform_0(%arg0: i32, %arg1: memref<8xi32, #tpu.memory_space<smem>>) -> (i32, i32) {
    %c0_i32 = arith.constant 0 : i32
    %c0_i32_0 = arith.constant 0 : i32
    %c0_i32_1 = arith.constant 0 : i32
    return %c0_i32, %c0_i32_0 : i32, i32
  }
  func.func @transform_1(%arg0: i32, %arg1: memref<8xi32, #tpu.memory_space<smem>>) -> (i32, i32) {
    %c0_i32 = arith.constant 0 : i32
    %c0_i32_0 = arith.constant 0 : i32
    %c0_i32_1 = arith.constant 0 : i32
    return %c0_i32, %c0_i32_0 : i32, i32
  }
  func.func @transform_2(%arg0: i32, %arg1: memref<8xi32, #tpu.memory_space<smem>>) -> (i32, i32) {
    %c0_i32 = arith.constant 0 : i32
    %c0_i32_0 = arith.constant 0 : i32
    %c0_i32_1 = arith.constant 0 : i32
    return %c0_i32, %c0_i32_0 : i32, i32
  }
  func.func @transform_3(%arg0: i32, %arg1: memref<8xi32, #tpu.memory_space<smem>>) -> (i32, i32) {
    %c0_i32 = arith.constant 0 : i32
    %c0_i32_0 = arith.constant 0 : i32
    return %arg0, %c0_i32 : i32, i32
  }
  func.func @transform_4(%arg0: i32, %arg1: memref<8xi32, #tpu.memory_space<smem>>) -> (i32, i32) {
    %c0_i32 = arith.constant 0 : i32
    %c0_i32_0 = arith.constant 0 : i32
    return %arg0, %c0_i32 : i32, i32
  }
}

</mosaic_0001>

<bundles_post_ra>
// kernel: tpu_custom_call.1
= control target key start
LH: loop header
LB: loop body
LE: loop exit
PB: predicated region body
PF: predicated region fallthrough
CT: control target
= control target key end

     0   :  { %s391_s18 = smov [#allocation3]   ;;  %s465_s0 = inlined_call_operand.hbm [shape: s32[8], index: 0, kind: input, shape index: {}]   ;;  %s466_s1 = inlined_call_operand.hbm [shape: f32[128,128], index: 1, kind: input, shape index: {}]   ;;  %s467_s2 = inlined_call_operand.hbm [shape: f32[128,128], index: 2, kind: input, shape index: {}]   ;;  %s468_s3 = inlined_call_operand.vmem [shape: f32[1,128], index: 3, kind: input, shape index: {}]   ;;  %s469_s4 = inlined_call_operand.hbm [shape: f32[8,128], index: 4, kind: output, shape index: {0}]   ;;  %s470_s5 = inlined_call_operand.hbm [shape: f32[8,128], index: 5, kind: output, shape index: {1}]  }
   0x1   :  { %12 = dma.hbm_to_smem %s465_s0, 16, %s391_s18, [#allocation2] }
   0x2   :  { %381 = dma.done.wait [#allocation2], 16 }
   0x3   :  { %382 = vsyncadd [#allocation2], 4294967280 }
   0x4   :  { %14 = sfence }
   0x5   :  { %15 = vsyncpa [#allocation5], 0 }
   0x6   :  { %16 = vsyncpa [#allocation8], 0 }
   0x7   :  { %17 = vsyncpa [#allocation6], 0 }
   0x8   :  { %18 = vsyncpa [#allocation11], 0  ;;  %s392_s21 = smov [#allocation4]  }
   0x9   :  { %s24_s22 = sshll.u32 %s392_s21, 4  ;;  %s25_s22 = int_to_ptr.vmem [resolvable:$true] %s24_s22 }
   0xa   :  { %s309_s23 = scalar_lea.vmem %s25_s22, 2048  ;;  %p314_p1 = scmp.lt.s32.totalorder %s25_s22, %s25_s22 }
   0xb   :  { %p310_p0 = scmp.ne.s32.totalorder %s25_s22, %s309_s23  ;;  %p315_p2 = scmp.lt.s32.totalorder %s309_s23, %s309_s23 }
   0xd   :  { %p316_p3 = por %p315_p2, %p314_p1 }
   0xf   :  { %p317_p4 = pnand %p316_p3, %p310_p0 }
  0x11   :  { %320 = shalt.err (!%p317_p4)
}
  0x12   :  { %s393_s24 = smov 128   ;;  %s394_s25 = smov 8  }
  0x13   :  { %30 = dma.hbm_to_vmem [thread:$0]  %s466_s1, 2048, %s25_s22, [#allocation5], %s393_s24, %s393_s24, %s394_s25  }
  0x14   :  { %s395_s27 = smov [#allocation7]  }
  0x15   :  { %s36_s28 = sshll.u32 %s395_s27, 4  ;;  %s37_s28 = int_to_ptr.vmem [resolvable:$true] %s36_s28 }
  0x16   :  { %s329_s29 = scalar_lea.vmem %s37_s28, 2048  ;;  %p334_p6 = scmp.lt.s32.totalorder %s37_s28, %s37_s28 }
  0x17   :  { %p330_p5 = scmp.ne.s32.totalorder %s37_s28, %s329_s29  ;;  %p335_p7 = scmp.lt.s32.totalorder %s329_s29, %s329_s29 }
  0x19   :  { %p336_p8 = por %p335_p7, %p334_p6 }
  0x1b   :  { %p337_p9 = pnand %p336_p8, %p330_p5 }
  0x1d   :  { %340 = shalt.err (!%p337_p9)
}
  0x1e   :  { %42 = dma.hbm_to_vmem [thread:$0]  %s467_s2, 2048, %s37_s28, [#allocation8], %s393_s24, %s393_s24, %s394_s25  }
  0x1f   :  { %383 = dma.done.wait [#allocation5], 2048  }
  0x20   :  { %384 = vsyncadd [#allocation5], 4294965248 }
  0x21   :  { %385 = dma.done.wait [#allocation8], 2048  }
  0x22   :  { %386 = vsyncadd [#allocation8], 4294965248  ;;  %v396_v0 = vmov 0.0   ;;  %vm397_vm0 = vmmov 0   ;;  %s52_s1 = sld [smem:[#allocation3]]  ;;  %v107_v1 = vld [vmem:[#allocation7 + $0x78] sm:$0xff] }
  0x23   :  { %249 = vmatprep.subr.mxu0 %v396_v0  ;;  %281 = vmatprep.mubr.msk.f32.mxu0 %vm397_vm0, %v396_v0  ;;  %s224_s7 = sld [smem:[#allocation3 + $0x1]]  ;;  %v106_v2 = vld [vmem:[#allocation7 + $0x70] sm:$0xff]  ;;  %v105_v3 = vld [vmem:[#allocation7 + $0x68] sm:$0xff]  ;;  %v104_v12 = vld [vmem:[#allocation7 + $0x60] sm:$0xff]  ;;  %s398_s21 = smov [#allocation10]  }
  0x24   :  { %s225_s8 = sld [smem:[#allocation3 + $0x2]]  ;;  %250 = vmatpush3.xpose.msra.mxu0 %v107_v1  ;;  %v103_v13 = vld [vmem:[#allocation7 + $0x58] sm:$0xff]  ;;  %v102_v14 = vld [vmem:[#allocation7 + $0x50] sm:$0xff]  ;;  %v101_v15 = vld [vmem:[#allocation7 + $0x48] sm:$0xff]  ;;  %s202_s22 = sshll.u32 %s398_s21, 4  ;;  %s203_s22 = int_to_ptr.vmem [resolvable:$true] %s202_s22 }
  0x25   :  { %s226_s9 = sld [smem:[#allocation3 + $0x3]]  ;;  %251 = vmatprep.subr.mxu0 %v396_v0  ;;  %v100_v16 = vld [vmem:[#allocation7 + $0x40] sm:$0xff]  ;;  %v99_v17 = vld [vmem:[#allocation7 + $0x38] sm:$0xff]  ;;  %v98_v18 = vld [vmem:[#allocation7 + $0x30] sm:$0xff]  ;;  %s341_s23 = scalar_lea.vmem %s203_s22, 128 }
  0x26   :  { %s227_s10 = sld [smem:[#allocation3 + $0x4]]  ;;  %v97_v19 = vld [vmem:[#allocation7 + $0x28] sm:$0xff]  ;;  %v96_v20 = vld [vmem:[#allocation7 + $0x20] sm:$0xff]  ;;  %v95_v21 = vld [vmem:[#allocation7 + $0x18] sm:$0xff]  ;;  %p342_p10 = scmp.ne.s32.totalorder %s203_s22, %s341_s23 }
  0x27   :  { %s228_s11 = sld [smem:[#allocation3 + $0x5]]  ;;  %v94_v22 = vld [vmem:[#allocation7 + $0x10] sm:$0xff]  ;;  %v93_v23 = vld [vmem:[#allocation7 + $0x8] sm:$0xff]  ;;  %v92_v24 = vld [vmem:[#allocation7] sm:$0xff]  ;;  %p346_p11 = scmp.lt.s32.totalorder %s203_s22, %s203_s22 }
  0x28   :  { %s229_s12 = sld [smem:[#allocation3 + $0x6]]  ;;  %252 = vmatpush3.xpose.msra.mxu0 %v106_v2  ;;  %s53_s13 = scalar_lea.vmem [#allocation4], %s52_s1 }
  0x29   :  { %s230_s2 = sld [smem:[#allocation3 + $0x7]]  ;;  %v54_v4 = vld [vmem:[%s53_s13] sm:$0x1]  ;;  %s58_s14 = scalar_lea.vmem [#allocation4], %s224_s7  ;;  %253 = vmatprep.subr.mxu0 %v396_v0 }
  0x2a   :  { %v59_v5 = vld [vmem:[%s58_s14] sm:$0x1]  ;;  %55 = vst [vmem:[#allocation10] sm:$0x1] %v54_v4  ;;  %s63_s15 = scalar_lea.vmem [#allocation4], %s225_s8  ;;  %p347_p12 = scmp.lt.s32.totalorder %s341_s23, %s341_s23 }
  0x2b   :  { %60 = vst [vmem:[#allocation10 + $0x1] sm:$0x1] %v59_v5  ;;  %v64_v6 = vld [vmem:[%s63_s15] sm:$0x1]  ;;  %s68_s16 = scalar_lea.vmem [#allocation4], %s226_s9 }
  0x2c   :  { %v69_v7 = vld [vmem:[%s68_s16] sm:$0x1]  ;;  %s73_s17 = scalar_lea.vmem [#allocation4], %s227_s10  ;;  %65 = vst [vmem:[#allocation10 + $0x2] sm:$0x1] %v64_v6  ;;  %254 = vmatpush3.xpose.msra.mxu0 %v105_v3  ;;  %p348_p13 = por %p347_p12, %p346_p11 }
  0x2d   :  { %v74_v8 = vld [vmem:[%s73_s17] sm:$0x1]  ;;  %70 = vst [vmem:[#allocation10 + $0x3] sm:$0x1] %v69_v7  ;;  %s78_s18 = scalar_lea.vmem [#allocation4], %s228_s11  ;;  %255 = vmatprep.subr.mxu0 %v396_v0 }
  0x2e   :  { %75 = vst [vmem:[#allocation10 + $0x4] sm:$0x1] %v74_v8  ;;  %v79_v9 = vld [vmem:[%s78_s18] sm:$0x1]  ;;  %s83_s19 = scalar_lea.vmem [#allocation4], %s229_s12  ;;  %p349_p0 = pnand %p348_p13, %p342_p10 }
  0x2f   :  { %80 = vst [vmem:[#allocation10 + $0x5] sm:$0x1] %v79_v9  ;;  %v84_v10 = vld [vmem:[%s83_s19] sm:$0x1]  ;;  %s88_s20 = scalar_lea.vmem [#allocation4], %s230_s2 }
  0x30   :  { %v89_v11 = vld [vmem:[%s88_s20] sm:$0x1]  ;;  %85 = vst [vmem:[#allocation10 + $0x6] sm:$0x1] %v84_v10  ;;  %256 = vmatpush3.xpose.msra.mxu0 %v104_v12 }
  0x31   :  { %90 = vst [vmem:[#allocation10 + $0x7] sm:$0x1] %v89_v11  ;;  %257 = vmatprep.subr.mxu0 %v396_v0 }
  0x34   :  { %258 = vmatpush3.xpose.msra.mxu0 %v103_v13 }
  0x35   :  { %259 = vmatprep.subr.mxu0 %v396_v0 }
  0x38   :  { %260 = vmatpush3.xpose.msra.mxu0 %v102_v14  ;;  %v91_v25 = vld [vmem:[#allocation10] sm:$0xff] }
  0x39   :  { %261 = vmatprep.subr.mxu0 %v396_v0 }
  0x3c   :  { %262 = vmatpush3.xpose.msra.mxu0 %v101_v15 }
  0x3d   :  { %263 = vmatprep.subr.mxu0 %v396_v0 }
  0x40   :  { %264 = vmatpush3.xpose.msra.mxu0 %v100_v16 }
  0x41   :  { %265 = vmatprep.subr.mxu0 %v396_v0 }
  0x44   :  { %266 = vmatpush3.xpose.msra.mxu0 %v99_v17 }
  0x45   :  { %267 = vmatprep.subr.mxu0 %v396_v0 }
  0x48   :  { %268 = vmatpush3.xpose.msra.mxu0 %v98_v18 }
  0x49   :  { %269 = vmatprep.subr.mxu0 %v396_v0 }
  0x4c   :  { %270 = vmatpush3.xpose.msra.mxu0 %v97_v19 }
  0x4d   :  { %271 = vmatprep.subr.mxu0 %v396_v0 }
  0x50   :  { %272 = vmatpush3.xpose.msra.mxu0 %v96_v20 }
  0x51   :  { %273 = vmatprep.subr.mxu0 %v396_v0 }
  0x54   :  { %274 = vmatpush3.xpose.msra.mxu0 %v95_v21 }
  0x55   :  { %275 = vmatprep.subr.mxu0 %v396_v0 }
  0x58   :  { %276 = vmatpush3.xpose.msra.mxu0 %v94_v22 }
  0x59   :  { %277 = vmatprep.subr.mxu0 %v396_v0 }
  0x5c   :  { %278 = vmatpush3.xpose.msra.mxu0 %v93_v23 }
  0x5d   :  { %279 = vmatprep.subr.mxu0 %v396_v0 }
  0x60   :  { %280 = vmatpush3.xpose.msra.mxu0 %v92_v24 }
  0x63   :  { %282 = vmatmul.mubr.f32.vlgmr.msra.gmra.mxu0 %v91_v25 }
  0x64   :  { %352 = shalt.err (!%p349_p0)
}
  0x65   :  { %205 = dma.vmem_to_hbm [thread:$0]  %s203_s22, 128, %s470_s5, [#allocation11]   ;;  %v231_v26 = vld [vmem:[%s468_s3] ss:$0 sm:$0xff] }
  0x66   :  { %s399_s27 = smov [#allocation9]  }
  0x67   :  { %s192_s28 = sshll.u32 %s399_s27, 4  ;;  %s193_s28 = int_to_ptr.vmem [resolvable:$true] %s192_s28 }
  0x68   :  { %s361_s29 = scalar_lea.vmem %s193_s28, 128  ;;  %p366_p2 = scmp.lt.s32.totalorder %s193_s28, %s193_s28 }
  0x69   :  { %p362_p1 = scmp.ne.s32.totalorder %s193_s28, %s361_s29  ;;  %p367_p3 = scmp.lt.s32.totalorder %s361_s29, %s361_s29 }
  0x6b   :  { %p368_p4 = por %p367_p3, %p366_p2 }
  0x6d   :  { %p369_p5 = pnand %p368_p4, %p362_p1 }
 0x123   :  { %v181_v27 = vpop.f32.mrf.mxu0 }
 0x124   :  { %v182_v28 = vadd.f32 %v231_v26, %v181_v27 }
 0x125   :  { %v283_v29 = vpop.f32.mrf.mxu0 }
 0x126   :  { %185 = vst [vmem:[#allocation9] sm:$0xff] %v182_v28 }
 0x127   :  { %372 = shalt.err (!%p369_p5)
}
 0x128   :  { %195 = dma.vmem_to_hbm [thread:$0]  %s193_s28, 128, %s469_s4, [#allocation6]  }
 0x129   :  { %387 = dma.done.wait [#allocation6], 128  }
 0x12a   :  { %388 = vsyncadd [#allocation6], 4294967168 }
 0x12b   :  { %389 = dma.done.wait [#allocation11], 128  }
 0x12c   :  { %390 = vsyncadd [#allocation11], 4294967168 }
 0x12d   :  { %212 = vsyncpa [#allocation5], 1 }
 0x12e   :  { %213 = vsyncpa [#allocation8], 1 }
 0x12f   :  { %214 = vsyncpa [#allocation6], 1 }
 0x130   :  { %215 = vsyncpa [#allocation11], 1 }

</bundles_post_ra>
